<compile_context>
chip_gen: v7x
topology: tpu7x:2x2x1
jax: 0.10.0
libtpu: 0.0.40
codegen_flags: <defaults>
</compile_context>

<pallas_src>
import math
import numpy as np
import jax
import jax.numpy as jnp
from jax.experimental import pallas as pl
from jax.experimental.pallas import tpu as pltpu

WINDOW_SIZE = 11
PAD = WINDOW_SIZE // 2
C1 = 0.01 ** 2
C2 = 0.03 ** 2


# ----------------------------------------------------------------------------
# Filter constants
# ----------------------------------------------------------------------------
def _gaussian_1d(window_size: int = WINDOW_SIZE, sigma: float = 1.5) -> np.ndarray:
    g = np.array(
        [math.exp(-((i - window_size // 2) ** 2) / float(2 * sigma ** 2))
         for i in range(window_size)],
        dtype=np.float64,
    )
    return (g / g.sum()).astype(np.float32)


def _banded_gaussian_matrix(n: int) -> np.ndarray:
    """A[o, i] = g[i - o + PAD]; A @ x == zero-padded 'same' 1D Gaussian conv."""
    g = _gaussian_1d()
    a = np.zeros((n, n), dtype=np.float32)
    for o in range(n):
        for k in range(WINDOW_SIZE):
            i = o + k - PAD
            if 0 <= i < n:
                a[o, i] = g[k]
    return a


def _column_band_slab(th: int, thp: int) -> np.ndarray:
    """Toeplitz band slab B (th, thp), B[r, j] = g[j - r].

    B @ slab == column Gaussian conv of the zero-padded input slab, where slab
    row j corresponds to padded row (tile_start + j).  Identical for every tile.
    """
    g = _gaussian_1d()
    b = np.zeros((th, thp), dtype=np.float32)
    for r in range(th):
        for k in range(WINDOW_SIZE):
            b[r, r + k] = g[k]
    return b


# ----------------------------------------------------------------------------
# Sizing helpers (generation-aware VMEM budget, lane packing, H tiling)
# ----------------------------------------------------------------------------
def _divisors(n: int):
    return [d for d in range(1, n + 1) if n % d == 0]


def _round_up(x: int, m: int) -> int:
    return ((x + m - 1) // m) * m


def _vmem_capacity_bytes() -> int:
    try:
        cap = int(pltpu.get_tpu_info().vmem_capacity_bytes)
    except Exception:
        cap = 64 * 1024 * 1024          # conservative fallback (v7x per-TC VMEM)
    return max(cap, 32 * 1024 * 1024)


def _pick_lane_pack(pool: int, w: int, max_lanes: int = 512) -> int:
    """Largest divisor of `pool` planes packed side-by-side along the lane dim."""
    best = 1
    for p in _divisors(pool):
        if p * w <= max_lanes:
            best = p
    return best


def _step_vmem_bytes(th: int, thp: int, pw: int, itemsize: int) -> int:
    inputs = 2 * 2 * thp * pw * itemsize            # x, y blocks (double-buffered)
    consts = 2 * (th * thp + pw * pw) * 4           # band slab + block-diag row matrix
    inter = (16 * thp + 14 * th) * pw * 4           # fields, row-pass, filtered, temps
    return inputs + consts + inter


def _pick_tile_h(H: int, pw: int, itemsize: int, budget: int) -> int:
    def thp(th):
        return _round_up(th + 2 * PAD, 8)

    if _step_vmem_bytes(H, thp(H), pw, itemsize) <= budget:
        return H                                     # no tiling needed
    cands = [d for d in _divisors(H) if d < H]
    cands.sort(key=lambda d: (d % 8 == 0, d), reverse=True)   # prefer mult-of-8, larger
    for th in cands:
        if _step_vmem_bytes(th, thp(th), pw, itemsize) <= budget:
            return th
    return min(cands) if cands else H                # last resort


# ----------------------------------------------------------------------------
# Kernel
# ----------------------------------------------------------------------------
def _make_ssim_kernel(TH: int, THP: int, PW: int):
    def kernel(x_ref, y_ref, bh_ref, bw_ref, o_ref):
        # x_ref / y_ref : (1, THP, PW) halo slab; P planes packed along lanes
        # bh_ref        : (TH, THP)  Toeplitz column band slab
        # bw_ref        : (PW, PW)   block-diagonal banded row matrix (A_w^T per plane)
        # o_ref         : (1, 8, 128) per-plane-group partial sum (resident across h)
        h = pl.program_id(1)

        xr = x_ref[0]
        yr = y_ref[0]
        # Squares / cross term in the input dtype (matches the torch reference),
        # then f32 for the MXU passes.
        x = xr.astype(jnp.float32)
        y = yr.astype(jnp.float32)
        x2 = (xr * xr).astype(jnp.float32)
        y2 = (yr * yr).astype(jnp.float32)
        xy = (xr * yr).astype(jnp.float32)

        bh = bh_ref[...]
        bw = bw_ref[...]

        # Row pass: ONE matmul for all 5 fields (stacked along the M/sublane dim).
        fields = jnp.concatenate([x, y, x2, y2, xy], axis=0)            # (5*THP, PW)
        rowp = jnp.dot(fields, bw, preferred_element_type=jnp.float32)  # (5*THP, PW)

        # Column pass: 5 band-slab matmuls on static, tile-aligned slices.
        def colp(f):
            return jnp.dot(bh, rowp[f * THP:(f + 1) * THP, :],
                           preferred_element_type=jnp.float32)          # (TH, PW)

        mu1, mu2, e_x2, e_y2, e_xy = [colp(f) for f in range(5)]

        mu1_sq = mu1 * mu1
        mu2_sq = mu2 * mu2
        mu1_mu2 = mu1 * mu2
        sigma1_sq = e_x2 - mu1_sq
        sigma2_sq = e_y2 - mu2_sq
        sigma12 = e_xy - mu1_mu2

        num = (2.0 * mu1_mu2 + C1) * (2.0 * sigma12 + C2)
        den = (mu1_sq + mu2_sq + C1) * (sigma1_sq + sigma2_sq + C2)

        # EUP reciprocal + one Newton step (~f32-exact, den >= C1*C2 > 0).
        inv = pl.reciprocal(den, approx=True)
        inv = inv * (2.0 - den * inv)
        ssim = num * inv                                                 # (TH, PW)

        # Fused reduction: one scalar partial sum per (plane-group, H-tile).
        s = jnp.sum(jnp.sum(ssim, axis=1, keepdims=True), axis=0, keepdims=True)

        @pl.when(h == 0)
        def _():
            o_ref[...] = jnp.zeros_like(o_ref)

        o_ref[...] += jnp.broadcast_to(s.reshape(1, 1, 1), o_ref.shape)

    return kernel


# ----------------------------------------------------------------------------
# Wrapper
# ----------------------------------------------------------------------------
def ssim_pallas(img1: jax.Array, img2: jax.Array, size_average: bool = True,
                tile_h: int | None = None):
    """Matches SSIM(window_size=11, size_average).forward(img1, img2)."""
    assert img1.shape == img2.shape and img1.ndim == 4
    B, C, H, W = img1.shape
    BC = B * C
    itemsize = np.dtype(img1.dtype).itemsize

    # Lane packing: P planes side by side along lanes (PW = P*W lanes).
    # For per-batch means (size_average=False) a lane group must stay inside
    # one batch element, so P then only divides C.
    pool = BC if size_average else C
    P = _pick_lane_pack(pool, W)
    PW = P * W
    NPg = BC // P

    capacity = _vmem_capacity_bytes()
    if tile_h is None:
        TH = _pick_tile_h(H, PW, itemsize, budget=int(capacity * 0.45))
    else:
        assert H % tile_h == 0
        TH = tile_h
    NH = H // TH
    THP = _round_up(TH + 2 * PAD, 8)            # halo slab rows (8-aligned)
    total_rows = (NH - 1) * TH + THP
    pad_bot = total_rows - H - PAD              # >= PAD; extra rows are zeros

    def prep(img):
        x = img.reshape(BC, H, W)
        x = jnp.pad(x, ((0, 0), (PAD, pad_bot), (0, 0)))        # zero 'same' padding
        x = x.reshape(NPg, P, total_rows, W).transpose(0, 2, 1, 3).reshape(
            NPg, total_rows, PW)
        if NH > 1:
            # Materialize overlapping halo slabs contiguously so the kernel's
            # BlockSpec indexing stays plain blocked (no element-mode windows).
            idx = (np.arange(NH)[:, None] * TH + np.arange(THP)[None, :]).reshape(-1)
            x = jnp.take(x, jnp.asarray(idx), axis=1)           # (NPg, NH*THP, PW)
        return x

    xs = prep(img1)
    ys = prep(img2)

    aw = _banded_gaussian_matrix(W)                                  # (W, W)
    bw = jnp.asarray(np.kron(np.eye(P, dtype=np.float32), aw.T))     # (PW, PW)
    bh = jnp.asarray(_column_band_slab(TH, THP))                     # (TH, THP)

    vmem_limit = int(min(capacity * 0.9, 100 * 2 ** 20))

    out = pl.pallas_call(
        _make_ssim_kernel(TH, THP, PW),
        out_shape=jax.ShapeDtypeStruct((NPg, 8, 128), jnp.float32),
        grid_spec=pltpu.PrefetchScalarGridSpec(
            num_scalar_prefetch=0,
            grid=(NPg, NH),                      # H-tile (reduction) axis last
            in_specs=[
                pl.BlockSpec((1, THP, PW), lambda i, h: (i, h, 0)),
                pl.BlockSpec((1, THP, PW), lambda i, h: (i, h, 0)),
                # Constant blocks: fetched once; now only KB-MB sized, so the
                # default double-buffering overhead is negligible.
                pl.BlockSpec((TH, THP), lambda i, h: (0, 0)),
                pl.BlockSpec((PW, PW), lambda i, h: (0, 0)),
            ],
            out_specs=pl.BlockSpec((1, 8, 128), lambda i, h: (i, 0, 0)),
        ),
        compiler_params=pltpu.CompilerParams(
            dimension_semantics=("parallel", "arbitrary"),
            vmem_limit_bytes=vmem_limit,
        ),
    )(xs, ys, bh, bw)

    group_sums = out[:, 0, 0]                                        # (NPg,)
    if size_average:
        return jnp.sum(group_sums) / (BC * H * W)
    per_batch = jnp.sum(group_sums.reshape(B, C // P), axis=1)
    return per_batch / (C * H * W)


# ----------------------------------------------------------------------------
# Pure-JAX reference (mirrors the PyTorch _ssim)
# ----------------------------------------------------------------------------
def ssim_reference(img1: jax.Array, img2: jax.Array, size_average: bool = True):
    B, C, H, W = img1.shape
    g = _gaussian_1d()
    w2d = jnp.asarray(np.outer(g, g).astype(np.float32))
    window = jnp.broadcast_to(w2d[None, None], (C, 1, WINDOW_SIZE, WINDOW_SIZE))

    def conv(x):
        return jax.lax.conv_general_dilated(
            x.astype(jnp.float32), window, (1, 1), [(PAD, PAD), (PAD, PAD)],
            dimension_numbers=("NCHW", "OIHW", "NCHW"), feature_group_count=C)

    mu1, mu2 = conv(img1), conv(img2)
    mu1_sq, mu2_sq, mu1_mu2 = mu1 * mu1, mu2 * mu2, mu1 * mu2
    sigma1_sq = conv(img1 * img1) - mu1_sq
    sigma2_sq = conv(img2 * img2) - mu2_sq
    sigma12 = conv(img1 * img2) - mu1_mu2
    ssim_map = ((2 * mu1_mu2 + C1) * (2 * sigma12 + C2)) / (
        (mu1_sq + mu2_sq + C1) * (sigma1_sq + sigma2_sq + C2))
    if size_average:
        return ssim_map.mean()
    return ssim_map.mean(axis=(1, 2, 3))


if __name__ == "__main__":
    key = jax.random.PRNGKey(0)
    k1, k2, k3, k4 = jax.random.split(key, 4)

    # Primary check: module-sized input (B=2, C=4, 16x16), both reduction modes.
    img1 = jax.random.uniform(k1, (2, 4, 16, 16), dtype=jnp.float32)
    img2 = jax.random.uniform(k2, (2, 4, 16, 16), dtype=jnp.float32)

    out_avg = ssim_pallas(img1, img2, size_average=True)
    jax.block_until_ready(out_avg)
    ref_avg = ssim_reference(img1, img2, size_average=True)
    assert abs(float(out_avg) - float(ref_avg)) < 1e-4, (float(out_avg), float(ref_avg))

    out_pb = ssim_pallas(img1, img2, size_average=False)
    jax.block_until_ready(out_pb)
    ref_pb = ssim_reference(img1, img2, size_average=False)
    assert np.allclose(np.asarray(out_pb), np.asarray(ref_pb), atol=1e-4), (out_pb, ref_pb)

    # Secondary check: exercise the H-tiled halo/band-slab path (NH > 1).
    img3 = jax.random.uniform(k3, (1, 2, 32, 16), dtype=jnp.float32)
    img4 = jax.random.uniform(k4, (1, 2, 32, 16), dtype=jnp.float32)
    out_t = ssim_pallas(img3, img4, size_average=True, tile_h=16)
    jax.block_until_ready(out_t)
    ref_t = ssim_reference(img3, img4, size_average=True)
    assert abs(float(out_t) - float(ref_t)) < 1e-4, (float(out_t), float(ref_t))

    print("KERNEL_OK")
</pallas_src>

<mosaic_0001>
module attributes {stable_mosaic.version = 11 : i64} {
  func.func @kernel(%arg0: i32, %arg1: i32, %arg2: memref<1x32x128xf32, #tpu.memory_space<vmem>>, %arg3: memref<1x32x128xf32, #tpu.memory_space<vmem>>, %arg4: memref<16x32xf32, #tpu.memory_space<vmem>>, %arg5: memref<128x128xf32, #tpu.memory_space<vmem>>, %arg6: memref<1x8x128xf32, #tpu.memory_space<vmem>>) attributes {dimension_semantics = [#tpu.dimension_semantics<parallel>, #tpu.dimension_semantics<arbitrary>], iteration_bounds = array<i64: 1, 1>, scalar_prefetch = 0 : i64, scratch_operands = 0 : i64, tpu.core_type = #tpu.core_type<tc>, window_params = [{transform_indices = @transform_0, window_bounds = array<i64: 1, 32, 128>}, {transform_indices = @transform_1, window_bounds = array<i64: 1, 32, 128>}, {pipeline_mode = #tpu.pipeline_mode<synchronous>, transform_indices = @transform_2, window_bounds = array<i64: 16, 32>}, {pipeline_mode = #tpu.pipeline_mode<synchronous>, transform_indices = @transform_3, window_bounds = array<i64: 128, 128>}, {transform_indices = @transform_4, window_bounds = array<i64: 1, 8, 128>}]} {
    %c0 = arith.constant 0 : index
    %c0_0 = arith.constant 0 : index
    %c0_1 = arith.constant 0 : index
    %0 = vector.load %arg2[%c0, %c0_0, %c0_1] : memref<1x32x128xf32, #tpu.memory_space<vmem>>, vector<1x32x128xf32>
    %1 = vector.shape_cast %0 : vector<1x32x128xf32> to vector<32x128xf32>
    %c0_2 = arith.constant 0 : index
    %c0_3 = arith.constant 0 : index
    %c0_4 = arith.constant 0 : index
    %2 = vector.load %arg3[%c0_2, %c0_3, %c0_4] : memref<1x32x128xf32, #tpu.memory_space<vmem>>, vector<1x32x128xf32>
    %3 = vector.shape_cast %2 : vector<1x32x128xf32> to vector<32x128xf32>
    %4 = arith.mulf %1, %1 : vector<32x128xf32>
    %5 = arith.mulf %3, %3 : vector<32x128xf32>
    %6 = arith.mulf %1, %3 : vector<32x128xf32>
    %c0_5 = arith.constant 0 : index
    %c0_6 = arith.constant 0 : index
    %7 = vector.load %arg4[%c0_5, %c0_6] : memref<16x32xf32, #tpu.memory_space<vmem>>, vector<16x32xf32>
    %c0_7 = arith.constant 0 : index
    %c0_8 = arith.constant 0 : index
    %8 = vector.load %arg5[%c0_7, %c0_8] : memref<128x128xf32, #tpu.memory_space<vmem>>, vector<128x128xf32>
    %9 = tpu.concatenate %1, %3, %4, %5, %6 in 0 : vector<32x128xf32>, vector<32x128xf32>, vector<32x128xf32>, vector<32x128xf32>, vector<32x128xf32> -> vector<160x128xf32>
    %cst = arith.constant dense<0.000000e+00> : vector<160x128xf32>
    %10 = tpu.matmul %9, %8, %cst {dimension_numbers = #tpu.dot_dimension_numbers<[1], [0], [0], [1], [0, 0, 1, 1], [], []>} : vector<160x128xf32>, vector<128x128xf32>, vector<160x128xf32> -> vector<160x128xf32>
    %11 = vector.extract_strided_slice %10 {offsets = [0, 0], sizes = [32, 128], strides = [1, 1]} : vector<160x128xf32> to vector<32x128xf32>
    %cst_9 = arith.constant dense<0.000000e+00> : vector<16x128xf32>
    %12 = tpu.matmul %7, %11, %cst_9 {dimension_numbers = #tpu.dot_dimension_numbers<[1], [0], [0], [1], [0, 0, 1, 1], [], []>} : vector<16x32xf32>, vector<32x128xf32>, vector<16x128xf32> -> vector<16x128xf32>
    %13 = vector.extract_strided_slice %10 {offsets = [32, 0], sizes = [32, 128], strides = [1, 1]} : vector<160x128xf32> to vector<32x128xf32>
    %cst_10 = arith.constant dense<0.000000e+00> : vector<16x128xf32>
    %14 = tpu.matmul %7, %13, %cst_10 {dimension_numbers = #tpu.dot_dimension_numbers<[1], [0], [0], [1], [0, 0, 1, 1], [], []>} : vector<16x32xf32>, vector<32x128xf32>, vector<16x128xf32> -> vector<16x128xf32>
    %15 = vector.extract_strided_slice %10 {offsets = [64, 0], sizes = [32, 128], strides = [1, 1]} : vector<160x128xf32> to vector<32x128xf32>
    %cst_11 = arith.constant dense<0.000000e+00> : vector<16x128xf32>
    %16 = tpu.matmul %7, %15, %cst_11 {dimension_numbers = #tpu.dot_dimension_numbers<[1], [0], [0], [1], [0, 0, 1, 1], [], []>} : vector<16x32xf32>, vector<32x128xf32>, vector<16x128xf32> -> vector<16x128xf32>
    %17 = vector.extract_strided_slice %10 {offsets = [96, 0], sizes = [32, 128], strides = [1, 1]} : vector<160x128xf32> to vector<32x128xf32>
    %cst_12 = arith.constant dense<0.000000e+00> : vector<16x128xf32>
    %18 = tpu.matmul %7, %17, %cst_12 {dimension_numbers = #tpu.dot_dimension_numbers<[1], [0], [0], [1], [0, 0, 1, 1], [], []>} : vector<16x32xf32>, vector<32x128xf32>, vector<16x128xf32> -> vector<16x128xf32>
    %19 = vector.extract_strided_slice %10 {offsets = [128, 0], sizes = [32, 128], strides = [1, 1]} : vector<160x128xf32> to vector<32x128xf32>
    %cst_13 = arith.constant dense<0.000000e+00> : vector<16x128xf32>
    %20 = tpu.matmul %7, %19, %cst_13 {dimension_numbers = #tpu.dot_dimension_numbers<[1], [0], [0], [1], [0, 0, 1, 1], [], []>} : vector<16x32xf32>, vector<32x128xf32>, vector<16x128xf32> -> vector<16x128xf32>
    %21 = arith.mulf %12, %12 : vector<16x128xf32>
    %22 = arith.mulf %14, %14 : vector<16x128xf32>
    %23 = arith.mulf %12, %14 : vector<16x128xf32>
    %24 = arith.subf %16, %21 : vector<16x128xf32>
    %25 = arith.subf %18, %22 : vector<16x128xf32>
    %26 = arith.subf %20, %23 : vector<16x128xf32>
    %cst_14 = arith.constant 2.000000e+00 : f32
    %27 = vector.broadcast %cst_14 : f32 to vector<16x128xf32>
    %28 = arith.mulf %27, %23 : vector<16x128xf32>
    %cst_15 = arith.constant 9.99999974E-5 : f32
    %29 = vector.broadcast %cst_15 : f32 to vector<16x128xf32>
    %30 = arith.addf %28, %29 : vector<16x128xf32>
    %cst_16 = arith.constant 2.000000e+00 : f32
    %31 = vector.broadcast %cst_16 : f32 to vector<16x128xf32>
    %32 = arith.mulf %31, %26 : vector<16x128xf32>
    %cst_17 = arith.constant 8.99999984E-4 : f32
    %33 = vector.broadcast %cst_17 : f32 to vector<16x128xf32>
    %34 = arith.addf %32, %33 : vector<16x128xf32>
    %35 = arith.mulf %30, %34 : vector<16x128xf32>
    %36 = arith.addf %21, %22 : vector<16x128xf32>
    %cst_18 = arith.constant 9.99999974E-5 : f32
    %37 = vector.broadcast %cst_18 : f32 to vector<16x128xf32>
    %38 = arith.addf %36, %37 : vector<16x128xf32>
    %39 = arith.addf %24, %25 : vector<16x128xf32>
    %cst_19 = arith.constant 8.99999984E-4 : f32
    %40 = vector.broadcast %cst_19 : f32 to vector<16x128xf32>
    %41 = arith.addf %39, %40 : vector<16x128xf32>
    %42 = arith.mulf %38, %41 : vector<16x128xf32>
    %43 = tpu.reciprocal %42 {approx = true} : vector<16x128xf32> -> vector<16x128xf32>
    %44 = arith.mulf %42, %43 : vector<16x128xf32>
    %cst_20 = arith.constant 2.000000e+00 : f32
    %45 = vector.broadcast %cst_20 : f32 to vector<16x128xf32>
    %46 = arith.subf %45, %44 : vector<16x128xf32>
    %47 = arith.mulf %43, %46 : vector<16x128xf32>
    %48 = arith.mulf %35, %47 : vector<16x128xf32>
    %cst_21 = arith.constant dense<0.000000e+00> : vector<16xf32>
    %49 = vector.multi_reduction <add>, %48, %cst_21 [1] : vector<16x128xf32> to vector<16xf32>
    %50 = vector.shape_cast %49 : vector<16xf32> to vector<16x1xf32>
    %cst_22 = arith.constant dense<0.000000e+00> : vector<1xf32>
    %51 = vector.multi_reduction <add>, %50, %cst_22 [0] : vector<16x1xf32> to vector<1xf32>
    %52 = vector.shape_cast %51 : vector<1xf32> to vector<1x1xf32>
    %c0_i32 = arith.constant 0 : i32
    %53 = arith.cmpi eq, %arg1, %c0_i32 : i32
    %54 = arith.extui %53 : i1 to i32
    %c0_i32_23 = arith.constant 0 : i32
    %55 = arith.cmpi ne, %54, %c0_i32_23 : i32
    scf.if %55 {
      %cst_30 = arith.constant 0.000000e+00 : f32
      %62 = vector.broadcast %cst_30 : f32 to vector<1x8x128xf32>
      %c0_31 = arith.constant 0 : index
      %c0_32 = arith.constant 0 : index
      %c0_33 = arith.constant 0 : index
      %63 = vector.load %arg6[%c0_31, %c0_32, %c0_33] : memref<1x8x128xf32, #tpu.memory_space<vmem>>, vector<1x8x128xf32>
      tpu.vector_store %arg6[%c0_31, %c0_32, %c0_33], %62 {strides = array<i32>} : memref<1x8x128xf32, #tpu.memory_space<vmem>>, vector<1x8x128xf32>,
    } else {
    }
    %c0_24 = arith.constant 0 : index
    %c0_25 = arith.constant 0 : index
    %c0_26 = arith.constant 0 : index
    %56 = vector.load %arg6[%c0_24, %c0_25, %c0_26] : memref<1x8x128xf32, #tpu.memory_space<vmem>>, vector<1x8x128xf32>
    %57 = vector.shape_cast %52 : vector<1x1xf32> to vector<1x1x1xf32>
    %58 = vector.shape_cast %57 : vector<1x1x1xf32> to vector<1x1x1xf32>
    %59 = vector.broadcast %58 : vector<1x1x1xf32> to vector<1x8x128xf32>
    %60 = arith.addf %56, %59 : vector<1x8x128xf32>
    %c0_27 = arith.constant 0 : index
    %c0_28 = arith.constant 0 : index
    %c0_29 = arith.constant 0 : index
    %61 = vector.load %arg6[%c0_27, %c0_28, %c0_29] : memref<1x8x128xf32, #tpu.memory_space<vmem>>, vector<1x8x128xf32>
    tpu.vector_store %arg6[%c0_27, %c0_28, %c0_29], %60 {strides = array<i32>} : memref<1x8x128xf32, #tpu.memory_space<vmem>>, vector<1x8x128xf32>,
    return
  }
  func.func @transform_0(%arg0: i32, %arg1: i32) -> (i32, i32, i32) {
    %c0_i32 = arith.constant 0 : i32
    %c0_i32_0 = arith.constant 0 : i32
    return %arg0, %arg1, %c0_i32 : i32, i32, i32
  }
  func.func @transform_1(%arg0: i32, %arg1: i32) -> (i32, i32, i32) {
    %c0_i32 = arith.constant 0 : i32
    %c0_i32_0 = arith.constant 0 : i32
    return %arg0, %arg1, %c0_i32 : i32, i32, i32
  }
  func.func @transform_2(%arg0: i32, %arg1: i32) -> (i32, i32) {
    %c0_i32 = arith.constant 0 : i32
    %c0_i32_0 = arith.constant 0 : i32
    %c0_i32_1 = arith.constant 0 : i32
    return %c0_i32, %c0_i32_0 : i32, i32
  }
  func.func @transform_3(%arg0: i32, %arg1: i32) -> (i32, i32) {
    %c0_i32 = arith.constant 0 : i32
    %c0_i32_0 = arith.constant 0 : i32
    %c0_i32_1 = arith.constant 0 : i32
    return %c0_i32, %c0_i32_0 : i32, i32
  }
  func.func @transform_4(%arg0: i32, %arg1: i32) -> (i32, i32, i32) {
    %c0_i32 = arith.constant 0 : i32
    %c0_i32_0 = arith.constant 0 : i32
    %c0_i32_1 = arith.constant 0 : i32
    return %arg0, %c0_i32, %c0_i32_0 : i32, i32, i32
  }
}

</mosaic_0001>

<bundles_post_ra>
// kernel: tpu_custom_call.1
= control target key start
LH: loop header
LB: loop body
LE: loop exit
PB: predicated region body
PF: predicated region fallthrough
CT: control target
= control target key end

     0   :  { %9 = vsyncpa [#allocation3], 0  ;;  %s1259_s0 = inlined_call_operand.hbm [shape: f32[1,32,128], index: 0, kind: input, shape index: {}]   ;;  %s1260_s1 = inlined_call_operand.hbm [shape: f32[1,32,128], index: 1, kind: input, shape index: {}]   ;;  %s1261_s2 = inlined_call_operand.hbm [shape: f32[16,32], index: 2, kind: input, shape index: {}]   ;;  %s1262_s3 = inlined_call_operand.hbm [shape: f32[128,128], index: 3, kind: input, shape index: {}]   ;;  %s1263_s4 = inlined_call_operand.hbm [shape: f32[1,8,128], index: 4, kind: output, shape index: {}]  }
   0x1   :  { %10 = vsyncpa [#allocation6], 0 }
   0x2   :  { %11 = vsyncpa [#allocation9], 0 }
   0x3   :  { %12 = vsyncpa [#allocation4], 0  ;;  %s1131_s15 = smov [#allocation5]   ;;  %s1132_s17 = smov [#allocation2]  }
   0x4   :  { %s30_s16 = sshll.u32 %s1131_s15, 4  ;;  %s18_s18 = sshll.u32 %s1132_s17, 4  ;;  %s31_s16 = int_to_ptr.vmem [resolvable:$true] %s30_s16  ;;  %s1163_s18 = int_to_ptr.vmem [resolvable:$true] %s18_s18 }
   0x5   :  { %s1013_s21 = scalar_lea.hbm %s1260_s1, 512 }
   0x6   :  { %p1014_p0 = scmp.ne.s32.totalorder %s1260_s1, %s1013_s21  ;;  %p1017_p1 = scmp.lt.u32.totalorder %s1013_s21, %s1260_s1 }
   0x8   :  { %p1019_p2 = pnand %p1017_p1, %p1014_p0 }
   0xa   :  { %1022 = shalt.err (!%p1019_p2)
}
   0xb   :  { %s1023_s26 = scalar_lea.vmem %s31_s16, 512  ;;  %p1028_p4 = scmp.lt.s32.totalorder %s31_s16, %s31_s16 }
   0xc   :  { %p1024_p3 = scmp.ne.s32.totalorder %s31_s16, %s1023_s26  ;;  %p1029_p5 = scmp.lt.s32.totalorder %s1023_s26, %s1023_s26 }
   0xe   :  { %p1030_p6 = por %p1029_p5, %p1028_p4 }
  0x10   :  { %p1031_p7 = pnand %p1030_p6, %p1024_p3 }
  0x12   :  { %1034 = shalt.err (!%p1031_p7)
}
  0x13   :  { %s1133_s27 = smov 128   ;;  %s1134_s28 = smov 8  }
  0x14   :  { %36 = dma.hbm_to_vmem [thread:$0]  %s1260_s1, 512, %s31_s16, [#allocation6], %s1133_s27, %s1133_s27, %s1134_s28  }
  0x15   :  { %s1035_s7 = scalar_lea.hbm %s1259_s0, 512 }
  0x16   :  { %p1036_p8 = scmp.ne.s32.totalorder %s1259_s0, %s1035_s7  ;;  %p1039_p9 = scmp.lt.u32.totalorder %s1035_s7, %s1259_s0 }
  0x18   :  { %p1041_p10 = pnand %p1039_p9, %p1036_p8 }
  0x1a   :  { %1044 = shalt.err (!%p1041_p10)
}
  0x1b   :  { %s1045_s12 = scalar_lea.vmem %s1163_s18, 512  ;;  %p1050_p12 = scmp.lt.s32.totalorder %s1163_s18, %s1163_s18 }
  0x1c   :  { %p1046_p11 = scmp.ne.s32.totalorder %s1163_s18, %s1045_s12  ;;  %p1051_p13 = scmp.lt.s32.totalorder %s1045_s12, %s1045_s12 }
  0x1e   :  { %p1052_p0 = por %p1051_p13, %p1050_p12 }
  0x20   :  { %p1053_p1 = pnand %p1052_p0, %p1046_p11 }
  0x22   :  { %1056 = shalt.err (!%p1053_p1)
}
  0x23   :  { %24 = dma.hbm_to_vmem [thread:$0]  %s1259_s0, 512, %s1163_s18, [#allocation3], %s1133_s27, %s1133_s27, %s1134_s28  }
  0x24   :  { %s1135_s14 = smov [#allocation7]   ;;  %s1136_s16 = smov [#allocation8]  }
  0x25   :  { %s42_s15 = sshll.u32 %s1135_s14, 4  ;;  %s54_s17 = sshll.u32 %s1136_s16, 4  ;;  %s43_s15 = int_to_ptr.vmem [resolvable:$true] %s42_s15  ;;  %s1200_s17 = int_to_ptr.vmem [resolvable:$true] %s54_s17 }
  0x26   :  { %s1057_s21 = scalar_lea.hbm %s1261_s2, 256 }
  0x27   :  { %p1058_p2 = scmp.ne.s32.totalorder %s1261_s2, %s1057_s21  ;;  %p1061_p3 = scmp.lt.u32.totalorder %s1057_s21, %s1261_s2 }
  0x29   :  { %p1063_p4 = pnand %p1061_p3, %p1058_p2 }
  0x2b   :  { %1066 = shalt.err (!%p1063_p4)
}
  0x2c   :  { %s1067_s0 = scalar_lea.vmem %s43_s15, 256  ;;  %p1072_p6 = scmp.lt.s32.totalorder %s43_s15, %s43_s15 }
  0x2d   :  { %p1068_p5 = scmp.ne.s32.totalorder %s43_s15, %s1067_s0  ;;  %p1073_p7 = scmp.lt.s32.totalorder %s1067_s0, %s1067_s0 }
  0x2f   :  { %p1074_p8 = por %p1073_p7, %p1072_p6 }
  0x31   :  { %p1075_p9 = pnand %p1074_p8, %p1068_p5 }
  0x33   :  { %1078 = shalt.err (!%p1075_p9)
}
  0x34   :  { %48 = dma.hbm_to_vmem [thread:$0]  %s1261_s2, 256, %s43_s15, [#allocation6], %s1133_s27, %s1133_s27, %s1134_s28  }
  0x35   :  { %s1079_s5 = scalar_lea.hbm %s1262_s3, 2048 }
  0x36   :  { %p1080_p10 = scmp.ne.s32.totalorder %s1262_s3, %s1079_s5  ;;  %p1083_p11 = scmp.lt.u32.totalorder %s1079_s5, %s1262_s3 }
  0x38   :  { %p1085_p12 = pnand %p1083_p11, %p1080_p10 }
  0x3a   :  { %1088 = shalt.err (!%p1085_p12)
}
  0x3b   :  { %s1089_s10 = scalar_lea.vmem %s1200_s17, 2048  ;;  %p1094_p0 = scmp.lt.s32.totalorder %s1200_s17, %s1200_s17 }
  0x3c   :  { %p1090_p13 = scmp.ne.s32.totalorder %s1200_s17, %s1089_s10  ;;  %p1095_p1 = scmp.lt.s32.totalorder %s1089_s10, %s1089_s10 }
  0x3e   :  { %p1096_p2 = por %p1095_p1, %p1094_p0 }
  0x40   :  { %p1097_p3 = pnand %p1096_p2, %p1090_p13 }
  0x42   :  { %1100 = shalt.err (!%p1097_p3)
}
  0x43   :  { %60 = dma.hbm_to_vmem [thread:$0]  %s1262_s3, 2048, %s1200_s17, [#allocation9], %s1133_s27, %s1133_s27, %s1134_s28  }
  0x44   :  { %1123 = dma.done.wait [#allocation3], 512  }
  0x45   :  { %1124 = vsyncadd [#allocation3], 4294966784 }
  0x46   :  { %1125 = dma.done.wait [#allocation6], 768  }
  0x47   :  { %1126 = vsyncadd [#allocation6], 4294966528 }
  0x48   :  { %1127 = dma.done.wait [#allocation9], 2048  }
  0x49   :  { %1128 = vsyncadd [#allocation9], 4294965248  ;;  %v95_v0 = vld [vmem:[#allocation8] sm:$0xff]  ;;  %v96_v1 = vld [vmem:[#allocation8 + $0x8] sm:$0xff]  ;;  %vm276_vm0 = vcmask 261120   ;;  %s1137_s3 = smov [#allocation10]  }
  0x4a   :  { %v97_v2 = vld [vmem:[#allocation8 + $0x10] sm:$0xff]  ;;  %v929_v3 = vpack.c.bf16 %v96_v1, %v95_v0  ;;  %v98_v4 = vld [vmem:[#allocation8 + $0x18] sm:$0xff]  ;;  %v99_v6 = vld [vmem:[#allocation8 + $0x20] sm:$0xff]  ;;  %s725_s27 = sshll.u32 %s1137_s3, 4  ;;  %s726_s27 = int_to_ptr.vmem [resolvable:$true] %s725_s27 }
  0x4b   :  { %v933_v5 = vpack.c.bf16 %v98_v4, %v97_v2  ;;  %v100_v7 = vld [vmem:[#allocation8 + $0x28] sm:$0xff]  ;;  %v73_v9 = vld [vmem:[#allocation2] sm:$0xff]  ;;  %v102_v11 = vld [vmem:[#allocation8 + $0x38] sm:$0xff]  ;;  %s1101_s28 = scalar_lea.vmem %s726_s27, 128  ;;  %p1106_p5 = scmp.lt.s32.totalorder %s726_s27, %s726_s27 }
  0x4c   :  { %930 = vmatprep.subr.bf16.mxu0 %v929_v3  ;;  %v937_v8 = vpack.c.bf16 %v100_v7, %v99_v6  ;;  %v101_v10 = vld [vmem:[#allocation8 + $0x30] sm:$0xff]  ;;  %844 = vmatprep.mubr.f32.mxu0 %v73_v9  ;;  %v103_v13 = vld [vmem:[#allocation8 + $0x40] sm:$0xff]  ;;  %v104_v14 = vld [vmem:[#allocation8 + $0x48] sm:$0xff]  ;;  %v81_v32 = vmul.f32 %v73_v9, %v73_v9  ;;  %p1102_p4 = scmp.ne.s32.totalorder %s726_s27, %s1101_s28  ;;  %p1107_p6 = scmp.lt.s32.totalorder %s1101_s28, %s1101_s28 }
  0x4d   :  { %932 = vmatpush3.bf16.msra.mxu0 %v929_v3  ;;  %v941_v12 = vpack.c.bf16 %v102_v11, %v101_v10  ;;  %v945_v15 = vpack.c.bf16 %v104_v14, %v103_v13  ;;  %v105_v16 = vld [vmem:[#allocation8 + $0x50] sm:$0xff]  ;;  %v106_v17 = vld [vmem:[#allocation8 + $0x58] sm:$0xff]  ;;  %v107_v19 = vld [vmem:[#allocation8 + $0x60] sm:$0xff] }
  0x4e   :  { %934 = vmatprep.subr.bf16.mxu0 %v933_v5  ;;  %v949_v18 = vpack.c.bf16 %v106_v17, %v105_v16  ;;  %v108_v20 = vld [vmem:[#allocation8 + $0x68] sm:$0xff]  ;;  %v109_v22 = vld [vmem:[#allocation8 + $0x70] sm:$0xff]  ;;  %v110_v23 = vld [vmem:[#allocation8 + $0x78] sm:$0xff]  ;;  %p1108_p7 = por %p1107_p6, %p1106_p5 }
  0x4f   :  { %v953_v21 = vpack.c.bf16 %v108_v20, %v107_v19  ;;  %v957_v24 = vpack.c.bf16 %v110_v23, %v109_v22  ;;  %v74_v25 = vld [vmem:[#allocation2 + $0x8] sm:$0xff]  ;;  %v75_v26 = vld [vmem:[#allocation2 + $0x10] sm:$0xff]  ;;  %v76_v27 = vld [vmem:[#allocation2 + $0x18] sm:$0xff] }
  0x50   :  { %v77_v28 = vld [vmem:[#allocation5] sm:$0xff]  ;;  %v78_v29 = vld [vmem:[#allocation5 + $0x8] sm:$0xff]  ;;  %v79_v30 = vld [vmem:[#allocation5 + $0x10] sm:$0xff]  ;;  %v82_v33 = vmul.f32 %v74_v25, %v74_v25  ;;  %v83_v34 = vmul.f32 %v75_v26, %v75_v26  ;;  %v84_v35 = vmul.f32 %v76_v27, %v76_v27  ;;  %p1109_p8 = pnand %p1108_p7, %p1102_p4 }
  0x51   :  { %936 = vmatpush3.bf16.msra.mxu0 %v933_v5  ;;  %v80_v31 = vld [vmem:[#allocation5 + $0x18] sm:$0xff]  ;;  %v85_v36 = vmul.f32 %v77_v28, %v77_v28  ;;  %v86_v37 = vmul.f32 %v78_v29, %v78_v29  ;;  %v87_v38 = vmul.f32 %v79_v30, %v79_v30  ;;  %v89_v40 = vmul.f32 %v77_v28, %v73_v9  ;;  %v93_v44 = vld [vmem:[#allocation7] sm:$0xff]  ;;  %v94_v53 = vld [vmem:[#allocation7 + $0x8] sm:$0xff] }
  0x52   :  { %938 = vmatprep.subr.bf16.mxu0 %v937_v8  ;;  %v88_v39 = vmul.f32 %v80_v31, %v80_v31  ;;  %v90_v41 = vmul.f32 %v78_v29, %v74_v25  ;;  %v91_v42 = vmul.f32 %v79_v30, %v75_v26  ;;  %v92_v43 = vmul.f32 %v80_v31, %v76_v27 }
  0x53   :  { %882 = vmatprep.mubr.msk.f32.mxu1 %vm276_vm0, %v93_v44 }
  0x55   :  { %940 = vmatpush3.bf16.msra.mxu0 %v937_v8 }
  0x56   :  { %942 = vmatprep.subr.bf16.mxu0 %v941_v12 }
  0x59   :  { %944 = vmatpush3.bf16.msra.mxu0 %v941_v12 }
  0x5a   :  { %946 = vmatprep.subr.bf16.mxu0 %v945_v15 }
  0x5d   :  { %948 = vmatpush3.bf16.msra.mxu0 %v945_v15 }
  0x5e   :  { %950 = vmatprep.subr.bf16.mxu0 %v949_v18 }
  0x61   :  { %952 = vmatpush3.bf16.msra.mxu0 %v949_v18 }
  0x62   :  { %954 = vmatprep.subr.bf16.mxu0 %v953_v21 }
  0x65   :  { %956 = vmatpush3.bf16.msra.mxu0 %v953_v21 }
  0x66   :  { %958 = vmatprep.subr.bf16.mxu0 %v957_v24 }
  0x69   :  { %960 = vmatpush3.bf16.msra.mxu0 %v957_v24 }
  0x6c   :  { %845 = vmatmul.mubr.f32.vlgmr.msra.gmra.mrb[0].mxu0 %v74_v25 }
  0x6d   :  { %847 = vmatprep.mubr.f32.mxu0 %v75_v26 }
  0x70   :  { %848 = vmatmul.mubr.f32.gmra.mrb[2].mxu0 %v76_v27 }
  0x71   :  { %850 = vmatprep.mubr.f32.mxu0 %v77_v28 }
  0x74   :  { %851 = vmatmul.mubr.f32.gmra.mrb[4].mxu0 %v78_v29 }
  0x75   :  { %853 = vmatprep.mubr.f32.mxu0 %v79_v30 }
  0x78   :  { %854 = vmatmul.mubr.f32.gmra.mrb[6].mxu0 %v80_v31 }
  0x79   :  { %856 = vmatprep.mubr.f32.mxu0 %v81_v32 }
  0x7c   :  { %857 = vmatmul.mubr.f32.gmra.mrb[8].mxu0 %v82_v33 }
  0x7d   :  { %859 = vmatprep.mubr.f32.mxu0 %v83_v34 }
  0x80   :  { %860 = vmatmul.mubr.f32.gmra.mrb[10].mxu0 %v84_v35 }
  0x81   :  { %862 = vmatprep.mubr.f32.mxu0 %v85_v36 }
  0x84   :  { %863 = vmatmul.mubr.f32.gmra.mrb[12].mxu0 %v86_v37 }
  0x85   :  { %865 = vmatprep.mubr.f32.mxu0 %v87_v38 }
  0x88   :  { %866 = vmatmul.mubr.f32.gmra.mrb[14].mxu0 %v88_v39 }
  0x89   :  { %868 = vmatprep.mubr.f32.mxu0 %v89_v40 }
  0x8c   :  { %869 = vmatmul.mubr.f32.gmra.mrb[16].mxu0 %v90_v41 }
  0x8d   :  { %871 = vmatprep.mubr.f32.mxu0 %v91_v42 }
  0x90   :  { %872 = vmatmul.mubr.f32.gmra.mrb[18].mxu0 %v92_v43 }
 0x13f   :  { %v846_v45 = vpop.f32.mrb[0].mxu0 }
 0x140   :  { %v177_v46 = vpop.f32.mrb[1].mxu0 }
 0x141   :  { %v961_v47 = vpack.c.bf16 %v846_v45, %v177_v46 }
 0x143   :  { %v849_v48 = vpop.f32.mrb[2].mxu0  ;;  %962 = vmatprep.subr.bf16.mxu1 %v961_v47 }
 0x144   :  { %v187_v49 = vpop.f32.mrb[3].mxu0  ;;  %964 = vmatpush3.bf16.msra.mxu1 %v961_v47 }
 0x145   :  { %v965_v50 = vpack.c.bf16 %v849_v48, %v187_v49 }
 0x147   :  { %v852_v51 = vpop.f32.mrb[4].mxu0  ;;  %966 = vmatprep.subr.bf16.mxu1 %v965_v50 }
 0x148   :  { %v197_v52 = vpop.f32.mrb[5].mxu0  ;;  %968 = vmatpush3.bf16.msra.mxu1 %v965_v50 }
 0x149   :  { %v969_v54 = vpack.c.bf16 %v852_v51, %v197_v52 }
 0x14b   :  { %v855_v55 = vpop.f32.mrb[6].mxu0  ;;  %883 = vmatmul.mubr.msk.f32.vlgmr.msra.gmra.mrb[0].mxu1 %vm276_vm0, %v94_v53  ;;  %970 = vmatprep.subr.bf16.mxu1 %v969_v54 }
 0x14c   :  { %v207_v56 = vpop.f32.mrb[7].mxu0  ;;  %972 = vmatpush3.bf16.msra.mxu1 %v969_v54  ;;  %893 = vmatprep.mubr.msk.f32.mxu1 %vm276_vm0, %v93_v44 }
 0x14d   :  { %v973_v57 = vpack.c.bf16 %v855_v55, %v207_v56 }
 0x14f   :  { %v858_v58 = vpop.f32.mrb[8].mxu0  ;;  %974 = vmatprep.subr.bf16.mxu1 %v973_v57 }
 0x150   :  { %v217_v59 = vpop.f32.mrb[9].mxu0  ;;  %976 = vmatpush3.bf16.msra.mxu1 %v973_v57 }
 0x151   :  { %v977_v60 = vpack.c.bf16 %v858_v58, %v217_v59 }
 0x153   :  { %v861_v61 = vpop.f32.mrb[10].mxu0  ;;  %894 = vmatmul.mubr.msk.f32.vlgmr.msra.gmra.mrb[2].mxu1 %vm276_vm0, %v94_v53  ;;  %978 = vmatprep.subr.bf16.mxu1 %v977_v60 }
 0x154   :  { %v227_v62 = vpop.f32.mrb[11].mxu0  ;;  %980 = vmatpush3.bf16.msra.mxu1 %v977_v60  ;;  %904 = vmatprep.mubr.msk.f32.mxu1 %vm276_vm0, %v93_v44 }
 0x155   :  { %v981_v63 = vpack.c.bf16 %v861_v61, %v227_v62 }
 0x157   :  { %v864_v0 = vpop.f32.mrb[12].mxu0  ;;  %982 = vmatprep.subr.bf16.mxu1 %v981_v63 }
 0x158   :  { %v237_v1 = vpop.f32.mrb[13].mxu0  ;;  %984 = vmatpush3.bf16.msra.mxu1 %v981_v63 }
 0x159   :  { %v985_v2 = vpack.c.bf16 %v864_v0, %v237_v1 }
 0x15b   :  { %v867_v3 = vpop.f32.mrb[14].mxu0  ;;  %905 = vmatmul.mubr.msk.f32.vlgmr.msra.gmra.mrb[4].mxu1 %vm276_vm0, %v94_v53  ;;  %986 = vmatprep.subr.bf16.mxu1 %v985_v2 }
 0x15c   :  { %v247_v4 = vpop.f32.mrb[15].mxu0  ;;  %988 = vmatpush3.bf16.msra.mxu1 %v985_v2  ;;  %915 = vmatprep.mubr.msk.f32.mxu1 %vm276_vm0, %v93_v44 }
 0x15d   :  { %v989_v5 = vpack.c.bf16 %v867_v3, %v247_v4 }
 0x15f   :  { %v870_v6 = vpop.f32.mrb[16].mxu0  ;;  %990 = vmatprep.subr.bf16.mxu1 %v989_v5 }
 0x160   :  { %v257_v7 = vpop.f32.mrb[17].mxu0  ;;  %992 = vmatpush3.bf16.msra.mxu1 %v989_v5 }
 0x161   :  { %v993_v8 = vpack.c.bf16 %v870_v6, %v257_v7 }
 0x163   :  { %v873_v9 = vpop.f32.mrb[18].mxu0  ;;  %916 = vmatmul.mubr.msk.f32.vlgmr.msra.gmra.mrb[6].mxu1 %vm276_vm0, %v94_v53  ;;  %994 = vmatprep.subr.bf16.mxu1 %v993_v8 }
 0x164   :  { %v267_v10 = vpop.f32.mrb[19].mxu0  ;;  %996 = vmatpush3.bf16.msra.mxu1 %v993_v8  ;;  %926 = vmatprep.mubr.msk.f32.mxu1 %vm276_vm0, %v93_v44 }
 0x165   :  { %v997_v11 = vpack.c.bf16 %v873_v9, %v267_v10 }
 0x167   :  { %998 = vmatprep.subr.bf16.mxu1 %v997_v11 }
 0x168   :  { %1000 = vmatpush3.bf16.msra.mxu1 %v997_v11 }
 0x16b   :  { %927 = vmatmul.mubr.msk.f32.vlgmr.msra.gmra.mrb[8].mxu1 %vm276_vm0, %v94_v53 }
 0x21e   :  { %v884_v12 = vpop.f32.mrb[0].mxu1 }
 0x21f   :  { %v349_v13 = vpop.f32.mrb[1].mxu1  ;;  %v659_v15 = vmul.f32 %v884_v12, %v884_v12 }
 0x220   :  { %v658_v19 = vmul.f32 %v349_v13, %v349_v13 }
 0x226   :  { %v895_v14 = vpop.f32.mrb[2].mxu1 }
 0x227   :  { %v661_v16 = vmul.f32 %v895_v14, %v895_v14  ;;  %v663_v17 = vmul.f32 %v895_v14, %v884_v12  ;;  %v424_v18 = vpop.f32.mrb[3].mxu1 }
 0x228   :  { %v660_v20 = vmul.f32 %v424_v18, %v424_v18  ;;  %v662_v21 = vmul.f32 %v424_v18, %v349_v13 }
 0x229   :  { %v681_v22 = vadd.f32 %v661_v16, %v659_v15  ;;  %v671_v41 = vmul.f32 2.0, %v663_v17 }
 0x22a   :  { %v680_v23 = vadd.f32 %v660_v20, %v658_v19  ;;  %v670_v44 = vmul.f32 2.0, %v662_v21 }
 0x22b   :  { %v683_v34 = vadd.f32 0.0001, %v681_v22  ;;  %v673_v48 = vadd.f32 0.0001, %v671_v41 }
 0x22c   :  { %v682_v36 = vadd.f32 0.0001, %v680_v23  ;;  %v672_v51 = vadd.f32 0.0001, %v670_v44 }
 0x22e   :  { %v906_v24 = vpop.f32.mrb[4].mxu1 }
 0x22f   :  { %v665_v25 = vsub.f32 %v906_v24, %v659_v15  ;;  %v499_v26 = vpop.f32.mrb[5].mxu1 }
 0x230   :  { %v664_v27 = vsub.f32 %v499_v26, %v658_v19 }
 0x236   :  { %v917_v28 = vpop.f32.mrb[6].mxu1 }
 0x237   :  { %v667_v29 = vsub.f32 %v917_v28, %v661_v16  ;;  %v574_v30 = vpop.f32.mrb[7].mxu1 }
 0x238   :  { %v666_v31 = vsub.f32 %v574_v30, %v660_v20 }
 0x239   :  { %v685_v32 = vadd.f32 %v667_v29, %v665_v25 }
 0x23a   :  { %v684_v33 = vadd.f32 %v666_v31, %v664_v27 }
 0x23b   :  { %v687_v35 = vadd.f32 0.0009, %v685_v32 }
 0x23c   :  { %v686_v37 = vadd.f32 0.0009, %v684_v33 }
 0x23d   :  { %v689_v38 = vmul.f32 %v687_v35, %v683_v34 }
 0x23e   :  { %v688_v39 = vmul.f32 %v686_v37, %v682_v36  ;;  %v928_v40 = vpop.f32.mrb[8].mxu1 }
 0x23f   :  { %1009 = vrcp.f32 %v689_v38  ;;  %v669_v42 = vsub.f32 %v928_v40, %v663_v17  ;;  %v649_v43 = vpop.f32.mrb[9].mxu1 }
 0x240   :  { %1011 = vrcp.f32 %v688_v39  ;;  %v668_v45 = vsub.f32 %v649_v43, %v662_v21 }
 0x241   :  { %v675_v46 = vmul.f32 2.0, %v669_v42 }
 0x242   :  { %v674_v47 = vmul.f32 2.0, %v668_v45 }
 0x243   :  { %v677_v49 = vadd.f32 0.0009, %v675_v46 }
 0x244   :  { %v676_v50 = vadd.f32 0.0009, %v674_v47 }
 0x245   :  { %v679_v52 = vmul.f32 %v677_v49, %v673_v48 }
 0x246   :  { %v678_v53 = vmul.f32 %v676_v50, %v672_v51 }
 0x249   :  { %v1010_v54 = vpop.eup %1009 }
 0x24a   :  { %v1012_v55 = vpop.eup %1011  ;;  %v693_v56 = vmul.f32 %v1010_v54, %v689_v38 }
 0x24b   :  { %v692_v57 = vmul.f32 %v1012_v55, %v688_v39 }
 0x24c   :  { %v695_v58 = vsub.f32 2.0, %v693_v56 }
 0x24d   :  { %v694_v59 = vsub.f32 2.0, %v692_v57 }
 0x24e   :  { %v697_v60 = vmul.f32 %v1010_v54, %v695_v58 }
 0x24f   :  { %v696_v61 = vmul.f32 %v1012_v55, %v694_v59 }
 0x250   :  { %v699_v62 = vmul.f32 %v697_v60, %v679_v52 }
 0x251   :  { %v698_v63 = vmul.f32 %v696_v61, %v678_v53 }
 0x253   :  { %700 = vadd.xlane.f32.xlu0 %v698_v63 }
 0x257   :  { %702 = vadd.xlane.f32.xlu0 %v699_v62 }
 0x2e0   :  { %v701_v0 = vpop.xlane.xlu0 %700 }
 0x2e4   :  { %v703_v1 = vpop.xlane.xlu0 %702 }
 0x2e5   :  { %v704_v2 = vadd.f32 %v703_v1, %v701_v0 }
 0x2e7   :  { %v705_v3 = vrot.slane %v704_v2, 4 }
 0x2e9   :  { %v706_v4 = vadd.f32 %v705_v3, %v704_v2 }
 0x2eb   :  { %v707_v5 = vrot.slane %v706_v4, 2 }
 0x2ed   :  { %v708_v6 = vadd.f32 %v707_v5, %v706_v4 }
 0x2ef   :  { %v709_v7 = vrot.slane %v708_v6, 1 }
 0x2f1   :  { %v710_v8 = vadd.f32 %v709_v7, %v708_v6 }
 0x2f3   :  { %718 = vst [vmem:[#allocation10] sm:$0xff] %v710_v8 }
 0x2f4   :  { %1112 = shalt.err (!%p1109_p8)
}
 0x2f5   :  { %s1113_s13 = scalar_lea.hbm %s1263_s4, 128 }
 0x2f6   :  { %p1114_p9 = scmp.ne.s32.totalorder %s1263_s4, %s1113_s13  ;;  %p1117_p10 = scmp.lt.u32.totalorder %s1113_s13, %s1263_s4 }
 0x2f8   :  { %p1119_p11 = pnand %p1117_p10, %p1114_p9 }
 0x2fa   :  { %1122 = shalt.err (!%p1119_p11)
}
 0x2fb   :  { %728 = dma.vmem_to_hbm [thread:$0]  %s726_s27, 128, %s1263_s4, [#allocation4]  }
 0x2fc   :  { %1129 = dma.done.wait [#allocation4], 128  }
 0x2fd   :  { %1130 = vsyncadd [#allocation4], 4294967168 }
 0x2fe   :  { %732 = vsyncpa [#allocation3], 1 }
 0x2ff   :  { %733 = vsyncpa [#allocation6], 1 }
 0x300   :  { %734 = vsyncpa [#allocation9], 1 }
 0x301   :  { %735 = vsyncpa [#allocation4], 1 }

</bundles_post_ra>
